<compile_context>
chip_gen: v7x
topology: tpu7x:2x2x1
jax: 0.10.0
libtpu: 0.0.40
codegen_flags: <defaults>
</compile_context>

<pallas_src>
import functools
import math

import jax
import jax.numpy as jnp
import numpy as np
from jax import lax
from jax.experimental import pallas as pl
from jax.experimental.pallas import tpu as pltpu


def _embed_kernel(x_ref, out_ref, enc_ref, *, C, D, n_sp, TS, spatial, strides):
    """x_ref: (1, C, TS); out_ref: (1, C + 2*n_sp*D, TS);
    enc_ref: (2*n_sp*D, TS) VMEM scratch in the output dtype."""
    si = pl.program_id(0)
    b = pl.program_id(1)

    # The encoding tile depends only on the spatial-tile index (outer, slow grid
    # axis); rebuild it only on the first (inner, sequential) batch step.
    @pl.when(b == 0)
    def _build_encoding():
        # omega[d] = 10000 ** (-d / D)   (matches torch arange(0, 1, 1/D))
        d_idx = lax.broadcasted_iota(jnp.int32, (D, 1), 0).astype(jnp.float32)
        omega = jnp.exp(d_idx * (-(math.log(10000.0) / D)))            # (D, 1)

        # Flat spatial position of every lane in this tile.  f32 arithmetic is
        # exact for positions < 2^23 (plenty for image/volume-sized inputs).
        lane = lax.broadcasted_iota(jnp.int32, (1, TS), 1).astype(jnp.float32)
        pos = (si * TS).astype(jnp.float32) + lane                     # (1, TS)

        for i in range(n_sp):
            stride = float(strides[i])
            dim = float(spatial[i])
            q = jnp.floor(pos / stride)                # pos // stride
            coord = q - dim * jnp.floor(q / dim)       # (pos // stride) % dim
            angle = omega * coord                                      # (D, TS)
            # Cast once here (build time), not on every batch step.
            enc_ref[2 * i * D:(2 * i + 1) * D, :] = (
                jnp.sin(angle).astype(enc_ref.dtype))
            enc_ref[(2 * i + 1) * D:(2 * i + 2) * D, :] = (
                jnp.cos(angle).astype(enc_ref.dtype))

    # Pass-through of the input channels (the torch.cat along dim=1) ...
    out_ref[0, :C, :] = x_ref[0]
    # ... and the cached encoding, written as one contiguous slab.
    out_ref[0, C:, :] = enc_ref[...]


def _pick_spatial_tile(S, out_ch, itemsize, target_tile_bytes):
    """Largest 128-multiple tile within the byte budget (cdiv tiling: it need
    not divide S).  Guarantees >= 2 tiles whenever S > 128 for megacore."""
    if S <= 128:
        return S
    n128 = -(-S // 128)                               # lane chunks covering S
    bytes_per_chunk = max(1, out_ch * itemsize * 128)
    budget_chunks = max(1, target_tile_bytes // bytes_per_chunk)
    chunks = min(budget_chunks, n128)
    if chunks >= n128:
        # Would be a single tile: split so both v7x TensorCores get work.
        chunks = -(-n128 // 2)
    return int(chunks) * 128


def _tile_vmem_bytes(rows, cols, itemsize):
    # (8, 128)-padded estimate of one VMEM buffer.
    return (-(-rows // 8) * 8) * (-(-cols // 128) * 128) * itemsize


def sinusoidal_positional_embedding(x, encoding_dimension,
                                    target_tile_bytes=4 * 1024 * 1024):
    """x: (B, C, *spatial) -> (B, C + 2*len(spatial)*D, *spatial)."""
    D = int(encoding_dimension)
    B, C = int(x.shape[0]), int(x.shape[1])
    spatial = tuple(int(s) for s in x.shape[2:])
    n_sp = len(spatial)
    if D == 0 or n_sp == 0:
        return x

    S = int(np.prod(spatial))
    out_ch = C + 2 * n_sp * D
    itemsize = x.dtype.itemsize
    strides = tuple(int(np.prod(spatial[i + 1:], dtype=np.int64))
                    for i in range(n_sp))

    x_flat = x.reshape(B, C, S)

    TS = _pick_spatial_tile(S, out_ch, itemsize, target_tile_bytes)
    n_tiles = pl.cdiv(S, TS)

    vmem_limit = (2 * (_tile_vmem_bytes(C, TS, itemsize)
                       + _tile_vmem_bytes(out_ch, TS, itemsize))
                  + _tile_vmem_bytes(2 * n_sp * D, TS, itemsize)
                  + (4 << 20))
    # 48 MiB keeps headroom under v7x's 64 MiB physical VMEM; the tile budget
    # keeps the actual footprint far below this on v5e/v6e as well.
    vmem_limit = int(min(max(vmem_limit, 16 << 20), 48 << 20))

    kernel = functools.partial(_embed_kernel, C=C, D=D, n_sp=n_sp, TS=TS,
                               spatial=spatial, strides=strides)
    out_flat = pl.pallas_call(
        kernel,
        out_shape=jax.ShapeDtypeStruct((B, out_ch, S), x.dtype),
        grid_spec=pltpu.PrefetchScalarGridSpec(
            num_scalar_prefetch=0,
            grid=(n_tiles, B),
            in_specs=[pl.BlockSpec((1, C, TS), lambda si, b: (b, 0, si))],
            out_specs=pl.BlockSpec((1, out_ch, TS), lambda si, b: (b, 0, si)),
            scratch_shapes=[pltpu.VMEM((2 * n_sp * D, TS), x.dtype)],
        ),
        compiler_params=pltpu.CompilerParams(
            # INVARIANT: the enc_ref cache is only correct because the batch
            # axis is the inner, sequential ("arbitrary") grid axis, so b == 0
            # is the first step executed for every spatial tile.  Do not mark
            # the batch axis "parallel" or reorder the grid.
            dimension_semantics=("parallel", "arbitrary"),
            vmem_limit_bytes=vmem_limit,
        ),
    )(x_flat)
    return out_flat.reshape((B, out_ch) + spatial)


def _reference(x, D):
    """Plain-JAX replica of the PyTorch forward for correctness checking."""
    B, C = x.shape[0], x.shape[1]
    spatial = tuple(x.shape[2:])
    omega = 1.0 / (10000.0 ** (jnp.arange(D, dtype=jnp.float32) / D))
    pieces = []
    for i, L in enumerate(spatial):
        pos = jnp.arange(L, dtype=jnp.float32)
        ang = omega[:, None] * pos[None, :]                        # (D, L)
        shape = (D,) + tuple(L if j == i else 1 for j in range(len(spatial)))
        full = (D,) + spatial
        pieces.append(jnp.broadcast_to(jnp.sin(ang).reshape(shape), full))
        pieces.append(jnp.broadcast_to(jnp.cos(ang).reshape(shape), full))
    enc = jnp.concatenate(pieces, axis=0)                          # (2*n_sp*D, ...)
    enc = jnp.broadcast_to(enc[None], (B,) + enc.shape).astype(x.dtype)
    return jnp.concatenate([x, enc], axis=1)


if __name__ == "__main__":
    key = jax.random.PRNGKey(0)

    # Primary check: small NCHW shapes consistent with the module.
    B, C, H, W = 2, 4, 16, 16
    encoding_dimension = 4
    x = jax.random.normal(key, (B, C, H, W), dtype=jnp.float32)
    out = jax.block_until_ready(
        sinusoidal_positional_embedding(x, encoding_dimension))
    ref = _reference(x, encoding_dimension)
    assert out.shape == (B, C + 4 * encoding_dimension, H, W), out.shape
    np.testing.assert_allclose(np.asarray(out), np.asarray(ref),
                               rtol=1e-5, atol=1e-5)

    # Secondary check: non-128-aligned spatial size -> cdiv tiling with a
    # ragged final tile (exercises masked output writeback + in-kernel coords).
    x2 = jax.random.normal(jax.random.PRNGKey(1), (2, 3, 10, 20),
                           dtype=jnp.float32)
    out2 = jax.block_until_ready(sinusoidal_positional_embedding(x2, 2))
    np.testing.assert_allclose(np.asarray(out2), np.asarray(_reference(x2, 2)),
                               rtol=1e-5, atol=1e-5)

    # Tertiary check: 3 spatial dims, S < 128 (full-axis tile path).
    x3 = jax.random.normal(jax.random.PRNGKey(2), (1, 2, 4, 3, 6),
                           dtype=jnp.float32)
    out3 = jax.block_until_ready(sinusoidal_positional_embedding(x3, 3))
    np.testing.assert_allclose(np.asarray(out3), np.asarray(_reference(x3, 3)),
                               rtol=1e-5, atol=1e-5)

    print("KERNEL_OK")
</pallas_src>

<mosaic_0001>
module attributes {stable_mosaic.version = 11 : i64} {
  func.func @_embed_kernel(%arg0: i32, %arg1: i32, %arg2: memref<1x4x128xf32, #tpu.memory_space<vmem>>, %arg3: memref<1x20x128xf32, #tpu.memory_space<vmem>>, %arg4: memref<16x128xf32, #tpu.memory_space<vmem>>) attributes {dimension_semantics = [#tpu.dimension_semantics<parallel>, #tpu.dimension_semantics<arbitrary>], iteration_bounds = array<i64: 2, 2>, scalar_prefetch = 0 : i64, scratch_operands = 1 : i64, tpu.core_type = #tpu.core_type<tc>, window_params = [{transform_indices = @transform_0, window_bounds = array<i64: 1, 4, 128>}, {transform_indices = @transform_1, window_bounds = array<i64: 1, 20, 128>}]} {
    %c0_i32 = arith.constant 0 : i32
    %0 = arith.cmpi eq, %arg1, %c0_i32 : i32
    %1 = arith.extui %0 : i1 to i32
    %c0_i32_0 = arith.constant 0 : i32
    %2 = arith.cmpi ne, %1, %c0_i32_0 : i32
    scf.if %2 {
      %12 = tpu.iota {dimensions = array<i32: 0>} : vector<4x1xi32>
      %13 = arith.sitofp %12 : vector<4x1xi32> to vector<4x1xf32>
      %cst = arith.constant -2.30258512 : f32
      %14 = vector.broadcast %cst : f32 to vector<4x1xf32>
      %15 = arith.mulf %13, %14 : vector<4x1xf32>
      %16 = math.exp %15 : vector<4x1xf32>
      %17 = tpu.iota {dimensions = array<i32: 1>} : vector<1x128xi32>
      %18 = arith.sitofp %17 : vector<1x128xi32> to vector<1x128xf32>
      %c128_i32 = arith.constant 128 : i32
      %19 = arith.muli %arg0, %c128_i32 : i32
      %20 = arith.sitofp %19 : i32 to f32
      %21 = vector.broadcast %20 : f32 to vector<1x128xf32>
      %22 = arith.addf %21, %18 : vector<1x128xf32>
      %cst_10 = arith.constant 1.600000e+01 : f32
      %23 = vector.broadcast %cst_10 : f32 to vector<1x128xf32>
      %24 = arith.divf %22, %23 : vector<1x128xf32>
      %25 = math.floor %24 : vector<1x128xf32>
      %cst_11 = arith.constant 1.600000e+01 : f32
      %26 = vector.broadcast %cst_11 : f32 to vector<1x128xf32>
      %27 = arith.divf %25, %26 : vector<1x128xf32>
      %28 = math.floor %27 : vector<1x128xf32>
      %cst_12 = arith.constant 1.600000e+01 : f32
      %29 = vector.broadcast %cst_12 : f32 to vector<1x128xf32>
      %30 = arith.mulf %29, %28 : vector<1x128xf32>
      %31 = arith.subf %25, %30 : vector<1x128xf32>
      %32 = vector.broadcast %16 : vector<4x1xf32> to vector<4x128xf32>
      %33 = vector.broadcast %31 : vector<1x128xf32> to vector<4x128xf32>
      %34 = arith.mulf %32, %33 : vector<4x128xf32>
      %35 = math.sin %34 : vector<4x128xf32>
      %c0_13 = arith.constant 0 : index
      %c0_14 = arith.constant 0 : index
      %36 = vector.load %arg4[%c0_13, %c0_14] : memref<16x128xf32, #tpu.memory_space<vmem>>, vector<4x128xf32>
      tpu.vector_store %arg4[%c0_13, %c0_14], %35 {strides = array<i32>} : memref<16x128xf32, #tpu.memory_space<vmem>>, vector<4x128xf32>,
      %37 = math.cos %34 : vector<4x128xf32>
      %c4_15 = arith.constant 4 : index
      %c0_16 = arith.constant 0 : index
      %38 = vector.load %arg4[%c4_15, %c0_16] : memref<16x128xf32, #tpu.memory_space<vmem>>, vector<4x128xf32>
      tpu.vector_store %arg4[%c4_15, %c0_16], %37 {strides = array<i32>} : memref<16x128xf32, #tpu.memory_space<vmem>>, vector<4x128xf32>,
      %cst_17 = arith.constant 1.000000e+00 : f32
      %39 = vector.broadcast %cst_17 : f32 to vector<1x128xf32>
      %40 = arith.divf %22, %39 : vector<1x128xf32>
      %41 = math.floor %40 : vector<1x128xf32>
      %cst_18 = arith.constant 1.600000e+01 : f32
      %42 = vector.broadcast %cst_18 : f32 to vector<1x128xf32>
      %43 = arith.divf %41, %42 : vector<1x128xf32>
      %44 = math.floor %43 : vector<1x128xf32>
      %cst_19 = arith.constant 1.600000e+01 : f32
      %45 = vector.broadcast %cst_19 : f32 to vector<1x128xf32>
      %46 = arith.mulf %45, %44 : vector<1x128xf32>
      %47 = arith.subf %41, %46 : vector<1x128xf32>
      %48 = vector.broadcast %16 : vector<4x1xf32> to vector<4x128xf32>
      %49 = vector.broadcast %47 : vector<1x128xf32> to vector<4x128xf32>
      %50 = arith.mulf %48, %49 : vector<4x128xf32>
      %51 = math.sin %50 : vector<4x128xf32>
      %c8 = arith.constant 8 : index
      %c0_20 = arith.constant 0 : index
      %52 = vector.load %arg4[%c8, %c0_20] : memref<16x128xf32, #tpu.memory_space<vmem>>, vector<4x128xf32>
      tpu.vector_store %arg4[%c8, %c0_20], %51 {strides = array<i32>} : memref<16x128xf32, #tpu.memory_space<vmem>>, vector<4x128xf32>,
      %53 = math.cos %50 : vector<4x128xf32>
      %c12 = arith.constant 12 : index
      %c0_21 = arith.constant 0 : index
      %54 = vector.load %arg4[%c12, %c0_21] : memref<16x128xf32, #tpu.memory_space<vmem>>, vector<4x128xf32>
      tpu.vector_store %arg4[%c12, %c0_21], %53 {strides = array<i32>} : memref<16x128xf32, #tpu.memory_space<vmem>>, vector<4x128xf32>,
    } else {
    }
    %c0 = arith.constant 0 : index
    %c0_1 = arith.constant 0 : index
    %c0_2 = arith.constant 0 : index
    %3 = vector.load %arg2[%c0, %c0_1, %c0_2] : memref<1x4x128xf32, #tpu.memory_space<vmem>>, vector<1x4x128xf32>
    %4 = vector.shape_cast %3 : vector<1x4x128xf32> to vector<4x128xf32>
    %c0_3 = arith.constant 0 : index
    %c0_4 = arith.constant 0 : index
    %c0_5 = arith.constant 0 : index
    %5 = vector.load %arg3[%c0_3, %c0_4, %c0_5] : memref<1x20x128xf32, #tpu.memory_space<vmem>>, vector<1x4x128xf32>
    %6 = vector.shape_cast %5 : vector<1x4x128xf32> to vector<4x128xf32>
    %7 = vector.shape_cast %4 : vector<4x128xf32> to vector<1x4x128xf32>
    tpu.vector_store %arg3[%c0_3, %c0_4, %c0_5], %7 {strides = array<i32>} : memref<1x20x128xf32, #tpu.memory_space<vmem>>, vector<1x4x128xf32>,
    %c0_6 = arith.constant 0 : index
    %c0_7 = arith.constant 0 : index
    %8 = vector.load %arg4[%c0_6, %c0_7] : memref<16x128xf32, #tpu.memory_space<vmem>>, vector<16x128xf32>
    %c0_8 = arith.constant 0 : index
    %c4 = arith.constant 4 : index
    %c0_9 = arith.constant 0 : index
    %9 = vector.load %arg3[%c0_8, %c4, %c0_9] : memref<1x20x128xf32, #tpu.memory_space<vmem>>, vector<1x16x128xf32>
    %10 = vector.shape_cast %9 : vector<1x16x128xf32> to vector<16x128xf32>
    %11 = vector.shape_cast %8 : vector<16x128xf32> to vector<1x16x128xf32>
    tpu.vector_store %arg3[%c0_8, %c4, %c0_9], %11 {strides = array<i32>} : memref<1x20x128xf32, #tpu.memory_space<vmem>>, vector<1x16x128xf32>,
    return
  }
  func.func @transform_0(%arg0: i32, %arg1: i32) -> (i32, i32, i32) {
    %c0_i32 = arith.constant 0 : i32
    %c0_i32_0 = arith.constant 0 : i32
    return %arg1, %c0_i32, %arg0 : i32, i32, i32
  }
  func.func @transform_1(%arg0: i32, %arg1: i32) -> (i32, i32, i32) {
    %c0_i32 = arith.constant 0 : i32
    %c0_i32_0 = arith.constant 0 : i32
    return %arg1, %c0_i32, %arg0 : i32, i32, i32
  }
}

</mosaic_0001>

<bundles_post_ra>
// kernel: tpu_custom_call.1
= control target key start
LH: loop header
LB: loop body
LE: loop exit
PB: predicated region body
PF: predicated region fallthrough
CT: control target
= control target key end

     0   :  { %6 = vsyncpa [#allocation4], 0  ;;  %s1214_s0 = inlined_call_operand.hbm [shape: f32[2,4,256], index: 0, kind: input, shape index: {}]   ;;  %s1215_s1 = inlined_call_operand.vmem [shape: f32[2,20,256], index: 1, kind: output, shape index: {}]  }
   0x1   :  { %8 = vsyncpa [#allocation4 + $0x1], 0  ;;  %s971_s6 = smov 0   ;;  %s973_s7 = smov 0  }
   0x2   :  { %s975_s8 = smov 0   ;;  %s977_s9 = smov 0  }
   0x3   :  { %s979_s10 = smov 0   ;;  %s981_s11 = smov 0  }
   0x4   :  { %s983_s12 = smov 0   ;;  %s985_s13 = smov 0  }
   0x5 LB: > { %s729_s14 = sadd.s32 4294967295, %s952_s13   ;;  %s23_s15 = sadd.s32 1, %s944_s11  ;;  %s952_s13 = sphi %s985_s13, %s14_s13   ;;  %s948_s12 = sphi %s983_s12, %s1229_s12   ;;  %s944_s11 = sphi %s981_s11, %s1228_s11   ;;  %s940_s10 = sphi %s979_s10, %s1227_s10   ;;  %s936_s9 = sphi %s977_s9, %s1226_s9   ;;  %s932_s8 = sphi %s975_s8, %s1225_s8   ;;  %s928_s7 = sphi %s973_s7, %s1224_s7   ;;  %s924_s6 = sphi %s971_s6, %s1223_s6  }
   0x6   : > { %p24_p0 = scmp.ge.s32.totalorder %s23_s15, 2  ;;  %s26_s16 = sadd.s32 1, %s948_s12 }
   0x7   : > { %s35_s17 = sadd.s32 1, %s932_s8  ;;  %p42_p1 = scmp.ne.s32.totalorder %s932_s8, %s928_s7 }
   0x8   : > { %s1231_s15 = smov (%p24_p0, %s23_s15), 0  ;;  %s1233_s16 = smov (!%p24_p0, %s26_s16), %s948_s12 }
   0x9   : > { %s30_s18 = ssub.s32 %s944_s11, %s1231_s15  ;;  %p43_p2 = scmp.eq.s32.totalorder %s952_s13, 0 }
   0xa   : > { %p28_p3 = scmp.ge.s32.totalorder %s1233_s16, 2  ;;  %p48_p4 = scmp.ne.s32.totalorder %s928_s7, %s924_s6 }
   0xb   : > { %p1025_p5 = por %p43_p2, %p42_p1  ;;  %p49_p6 = scmp.eq.s32.totalorder %s729_s14, 0 }
   0xc   : > { %s1235_s16 = smov (%p28_p3, %s1233_s16), 0  ;;  %p74_p8 = scmp.eq.s32.totalorder %s729_s14, 3 }
   0xd   : > { %p1031_p7 = por %p49_p6, %p48_p4  ;;  %s31_s21 = ssub.s32 %s948_s12, %s1235_s16 }
   0xe   : > { %s32_s22 = sor.u32 %s31_s21, %s30_s18  ;;  %p1040_p9 = por %p74_p8, %p42_p1 }
   0xf   : > { %p33_p10 = scmp.eq.s32.totalorder %s32_s22, 0  ;;  %p775_p11 = scmp.lt.s32.totalorder %s952_s13, 4 }
  0x10   : > { %s1218_s23 = scalar_select %p1040_p9, 1, 0 }
  0x11   : > { %s100_s24 = sand.u32 1, %s932_s8   ;;  %s734_s25 = sshll.u32 %s944_s11, 1 }
  0x12   : > { %s1048_s26 = scalar_select %p33_p10, %s932_s8, %s35_s17  }
  0x13   : > { %s733_s27 = sshll.u32 %s100_s24, 2  ;;  %s109_s28 = sadd.s32 %s948_s12, %s734_s25 }
  0x14   : > { %s735_s29 = sshll.u32 %s109_s28, 6  ;;  %s104_s30 = scalar_lea.vmem [#allocation3], %s733_s27 }
  0x15   : > { %s113_s2 = sshll.u32 %s104_s30, 4  ;;  %s1054_s5 = scalar_lea.hbm %s1214_s0, %s735_s29  ;;  %s1056_s2 = int_to_ptr.vmem [resolvable:$true] %s113_s2 }
  0x16   : > { %p1060_p12 = pnand %p775_p11, %p1025_p5  ;;  %s101_s14 = scalar_lea.sflag [#allocation4], %s100_s24 }
  0x17   : > { %s856_s17 = scalar_lea.hbm %s1054_s5, 64  ;;  %s861_s19 = scalar_lea.hbm %s1214_s0, 256 }
  0x18   : > { %p857_p1 = scmp.ne.s32.totalorder %s1054_s5, %s856_s17  ;;  %p858_p2 = pneg %p1060_p12 }
  0x19   : > { %p862_p5 = scmp.lt.u32.totalorder %s1054_s5, %s1214_s0  ;;  %p863_p6 = scmp.lt.u32.totalorder %s861_s19, %s856_s17 }
  0x1a   : > { %p859_p3 = pnand %p858_p2, %p857_p1  ;;  %p865_p10 = scmp.lt.u32.totalorder %s856_s17, %s1054_s5 }
  0x1b   : > { %p864_p8 = por %p863_p6, %p862_p5 }
  0x1c   : > { %p860_p4 = pneg %p859_p3 }
  0x1d   : > { %p866_p11 = por %p865_p10, %p864_p8 }
  0x1f   : > { %p867_p13 = pnand %p866_p11, %p860_p4 }
  0x21   : > { %870 = shalt.err (!%p867_p13)
}
  0x22   : > { %s871_s24 = scalar_lea.vmem %s1056_s2, 64  ;;  %s954_s27 = smov [#allocation3]  }
  0x23   : > { %p872_p1 = scmp.ne.s32.totalorder %s1056_s2, %s871_s24  ;;  %s876_s28 = sshll.u32 %s954_s27, 4  ;;  %s877_s28 = int_to_ptr.vmem [resolvable:$false] %s876_s28 }
  0x24   : > { %s878_s29 = scalar_lea.vmem %s877_s28, 128  ;;  %p879_p9 = scmp.lt.s32.totalorder %s1056_s2, %s877_s28 }
  0x25   : > { %p874_p3 = pnand %p872_p1, %p858_p2  ;;  %p880_p5 = scmp.lt.s32.totalorder %s878_s29, %s871_s24 }
  0x27   : > { %p875_p0 = pneg %p874_p3  ;;  %p881_p6 = por %p880_p5, %p879_p9 }
  0x29   : > { %p882_p8 = pnand %p881_p6, %p875_p0 }
  0x2b   : > { %885 = shalt.err (!%p882_p8)
}
  0x2c   : > { %774 = dma.hbm_to_vmem [thread:$0]  (!%p1060_p12), %s1054_s5, 64, %s1056_s2, %s101_s14  }
  0x2d   : > { %p1220_p13 = scmp.lt.s32.totalorder %s952_s13, 5  ;;  %p1221_p4 = scmp.ge.s32.totalorder %s952_s13, 1 }
  0x2f   : > { %p119_p2 = pnand %p1221_p4, %p1220_p13 }
  0x30   : > { %s124_s30 = sand.u32 (!%p119_p2), 1, %s928_s7  }
  0x31   : > { %122 = sbr.rel (%p119_p2) target bundleno = 187 (0xbb), region = 24  ;;  %s737_s3 = sshll.u32 (!%p119_p2), %s124_s30, 2 }
  0x32   : > { %s125_s4 = scalar_lea.sflag (!%p119_p2), [#allocation4], %s124_s30  ;;  %s1096_s17 = scalar_lea.vmem (!%p119_p2), [#allocation3], %s737_s3 }
  0x38   : > { %919 = dma.done.wait (%p1031_p7), %s125_s4, 64  }
  0x39   : > { %921 = vsyncadd (%p1031_p7), %s125_s4, 4294967232  ;;  %s759_s6 = smul.u32 24, %s124_s30  ;;  %p738_p9 = scmp.ne.s32.totalorder %s936_s9, 0 }
  0x3a   : > { %v150_v0 = vlaneseq (!%p738_p9)  ;;  %s739_s2 = sshll.u32 (!%p738_p9), %s940_s10, 7  ;;  %v955_v45 = vmov (!%p738_p9), 683565275   ;;  %v956_v47 = vmov (!%p738_p9), 2475754826  }
  0x3b   : > { %s1102_s18 = scalar_lea.vmem [#allocation5], %s759_s6  ;;  %149 = sbr.rel (%p738_p9) target bundleno = 171 (0xab), region = 32  ;;  %v957_v49 = vmov (!%p738_p9), 2131351028   ;;  %v958_v51 = vmov (!%p738_p9), 2102212464  }
  0x3c   : > { %s160_s5 = scvt.s32.f32 (!%p738_p9), %s739_s2  ;;  %v151_v1 = vshrl.u32 (!%p738_p9), %v150_v0, 7  ;;  %v157_v2 = vand.u32 (!%p738_p9), 127, %v150_v0  ;;  %v959_v53 = vmov (!%p738_p9), 920167782   ;;  %v960_v61 = vmov (!%p738_p9), 1326507024  }
  0x3e   : > { %v161_v3 = vstv (!%p738_p9), %s160_s5  ;;  %v152_v4 = vcvt.s32.f32 (!%p738_p9), %v151_v1  ;;  %v158_v5 = vcvt.s32.f32 (!%p738_p9), %v157_v2 }
  0x40   : > { %v153_v6 = vmul.f32 (!%p738_p9), -2.3025851, %v152_v4  ;;  %v162_v7 = vadd.f32 (!%p738_p9), %v161_v3, %v158_v5 }
  0x42   : > { %v154_v8 = vmul.f32 1.442695, %v153_v6  ;;  %v164_v9 = vmul.f32 0.0625, %v162_v7  ;;  %v380_v10 = vfloor.f32 %v162_v7 }
  0x44   : > { %846 = vpow2.f32 %v154_v8  ;;  %v165_v11 = vfloor.f32 %v164_v9  ;;  %v381_v12 = vmul.f32 0.0625, %v380_v10 }
  0x46   : > { %v166_v13 = vmul.f32 0.0625, %v165_v11  ;;  %v382_v14 = vfloor.f32 %v381_v12 }
  0x48   : > { %v167_v15 = vfloor.f32 %v166_v13  ;;  %v383_v16 = vmul.f32 16.0, %v382_v14 }
  0x4a   : > { %v168_v17 = vmul.f32 16.0, %v167_v15  ;;  %v384_v18 = vsub.f32 %v380_v10, %v383_v16 }
  0x4c   : > { %v169_v19 = vsub.f32 %v165_v11, %v168_v17 }
  0x4e   : > { %v847_v20 = vpop.eup %846 }
  0x4f   : > { %v1106_v21 = vmul.f32 %v847_v20, %v169_v19  ;;  %v1108_v22 = vmul.f32 %v847_v20, %v384_v18 }
  0x51   : > { %v171_v23 = vand.u32 2147483647, %v1106_v21  ;;  %v174_v24 = vand.u32 2139095040, %v1106_v21  ;;  %v386_v25 = vand.u32 2147483647, %v1108_v22  ;;  %v389_v26 = vand.u32 2139095040, %v1108_v22 }
  0x52   : > { %vm173_vm14 = vcmp.lt.s32.totalorder %v1106_v21, 0 }
  0x53   : > { %v175_v27 = vshrl.u32 %v174_v24, 23  ;;  %v178_v28 = vand.u32 8388607, %v171_v23  ;;  %v390_v29 = vshrl.u32 %v389_v26, 23  ;;  %v393_v30 = vand.u32 8388607, %v386_v25 }
  0x54   : > { %vm172_vm15 = vcmp.le.f32.partialorder %v171_v23, 0.7853982 }
  0x55   : > { %v740_v31 = vadd.s32 4294967169, %v175_v27  ;;  %v748_v32 = vadd.s32 4294967169, %v390_v29  ;;  %v179_v34 = vor.u32 8388608, %v178_v28  ;;  %v394_v35 = vor.u32 8388608, %v393_v30 }
  0x57   : > { %v181_v33 = vadd.s32 1, %v740_v31  ;;  %v396_v36 = vadd.s32 1, %v748_v32  ;;  %v1118_v41 = vshll.u32 %v179_v34, 8  ;;  %v1120_v43 = vshll.u32 %v394_v35, 8 }
  0x59   : > { %vm182_vm0 = vcmp.gt.s32.totalorder %v181_v33, 0  ;;  %vm397_vm1 = vcmp.gt.s32.totalorder %v396_v36, 0 }
  0x5a   : > { %v183_v37 = vsel %vm182_vm0, %v181_v33, 0  ;;  %v398_v40 = vsel %vm397_vm1, %v396_v36, 0  ;;  %vm388_vm0 = vcmp.lt.s32.totalorder %v1108_v22, 0  ;;  %vm387_vm1 = vcmp.le.f32.partialorder %v386_v25, 0.7853982 }
  0x5b   : > { %v184_v38 = vshrl.u32 %v183_v37, 5  ;;  %v185_v39 = vand.u32 31, %v183_v37  ;;  %v400_v42 = vand.u32 31, %v398_v40  ;;  %v1122_v55 = vshrl.u32 %v398_v40, 5 }
  0x5d   : > { %v186_v44 = vsub.s32 32, %v185_v39  ;;  %v188_v46 = vshll.u32 %v955_v45, %v185_v39  ;;  %v191_v48 = vshll.u32 %v956_v47, %v185_v39  ;;  %v194_v50 = vshll.u32 %v957_v49, %v185_v39 }
  0x5e   : > { %v197_v52 = vshll.u32 %v958_v51, %v185_v39  ;;  %v200_v54 = vshll.u32 %v959_v53, %v185_v39  ;;  %vm203_vm2 = vcmp.lt.s32.totalorder %v184_v38, 1  ;;  %vm204_vm3 = vcmp.lt.s32.totalorder %v184_v38, 2 }
  0x5f   : > { %v187_v56 = vshrl.u32 %v955_v45, %v186_v44  ;;  %v189_v57 = vshrl.u32 %v956_v47, %v186_v44  ;;  %v192_v58 = vshrl.u32 %v957_v49, %v186_v44  ;;  %v195_v59 = vshrl.u32 %v958_v51, %v186_v44 }
  0x60   : > { %v198_v60 = vshrl.u32 %v959_v53, %v186_v44  ;;  %v201_v62 = vshrl.u32 %v960_v61, %v186_v44  ;;  %vm206_vm4 = vcmp.lt.s32.totalorder %v184_v38, 4  ;;  %v401_v2 = vsub.s32 32, %v400_v42 }
  0x61   : > { %v190_v63 = vor.u32 %v189_v57, %v188_v46  ;;  %v193_v0 = vor.u32 %v192_v58, %v191_v48  ;;  %v196_v1 = vor.u32 %v195_v59, %v194_v50  ;;  %vm205_vm5 = vcmp.lt.s32.totalorder %v184_v38, 3 }
  0x62   : > { %v199_v3 = vor.u32 %v198_v60, %v197_v52  ;;  %v202_v4 = vor.u32 %v201_v62, %v200_v54  ;;  %v403_v5 = vshll.u32 %v955_v45, %v400_v42  ;;  %v406_v13 = vshll.u32 %v956_v47, %v400_v42 }
  0x63   : > { %v207_v6 = vsel %vm203_vm2, %v187_v56, %v190_v63  ;;  %v208_v7 = vsel %vm206_vm4, %v196_v1, 2102212464  ;;  %v211_v8 = vsel %vm203_vm2, %v190_v63, %v193_v0  ;;  %v215_v9 = vsel %vm203_vm2, %v193_v0, %v196_v1 }
  0x64   : > { %v209_v10 = vsel %vm205_vm5, %v193_v0, %v208_v7  ;;  %v212_v11 = vsel %vm206_vm4, %v199_v3, 920167782  ;;  %v216_v12 = vsel %vm206_vm4, %v202_v4, 1326507024  ;;  %v402_v16 = vshrl.u32 %v955_v45, %v401_v2 }
  0x65   : > { %v213_v14 = vsel %vm205_vm5, %v196_v1, %v212_v11  ;;  %v217_v15 = vsel %vm205_vm5, %v199_v3, %v216_v12  ;;  %v404_v17 = vshrl.u32 %v956_v47, %v401_v2  ;;  %v210_v18 = vsel %vm204_vm3, %v207_v6, %v209_v10 }
  0x66   : > { %v214_v19 = vsel %vm204_vm3, %v211_v8, %v213_v14  ;;  %v218_v20 = vsel %vm204_vm3, %v215_v9, %v217_v15  ;;  %v407_v24 = vshrl.u32 %v957_v49, %v401_v2  ;;  %v409_v32 = vshll.u32 %v957_v49, %v400_v42 }
  0x67   : > { %v1131_v26 = vmul.u32.u64.low %v1118_v41, %v218_v20  ;;  %v1132_v27 = vmul.u32.u64.high %v1118_v41, %v218_v20, %v1131_v26  ;;  %v1135_v28 = vmul.u32.u64.low %v1118_v41, %v214_v19  ;;  %v1136_v29 = vmul.u32.u64.high %v1118_v41, %v214_v19, %v1135_v28 }
  0x68   : > { %v405_v30 = vor.u32 %v404_v17, %v403_v5  ;;  %v408_v31 = vor.u32 %v407_v24, %v406_v13  ;;  %v410_v33 = vshrl.u32 %v958_v51, %v401_v2  ;;  %v412_v34 = vshll.u32 %v958_v51, %v400_v42 }
  0x69   : > { %v413_v35 = vshrl.u32 %v959_v53, %v401_v2  ;;  %v415_v36 = vshll.u32 %v959_v53, %v400_v42  ;;  %v416_v37 = vshrl.u32 %v960_v61, %v401_v2  ;;  %v226_v38 = vmul.u32 %v1118_v41, %v210_v18 }
  0x6a   : > { %v411_v39 = vor.u32 %v410_v33, %v409_v32  ;;  %vm418_vm6 = vcmp.lt.s32.totalorder %v1122_v55, 1  ;;  %vm419_vm7 = vcmp.lt.s32.totalorder %v1122_v55, 2  ;;  %vm228_vm8 = vc.u32 %v1132_v27, %v1135_v28 }
  0x6b   : > { %v229_v40 = vadd.s32 1, %v1136_v29  ;;  %v414_v44 = vor.u32 %v413_v35, %v412_v34  ;;  %vm420_vm9 = vcmp.lt.s32.totalorder %v1122_v55, 3  ;;  %v417_v45 = vor.u32 %v416_v37, %v415_v36 }
  0x6c   : > { %vm421_vm10 = vcmp.lt.s32.totalorder %v1122_v55, 4  ;;  %v422_v46 = vsel %vm418_vm6, %v402_v16, %v405_v30  ;;  %v426_v42 = vsel %vm418_vm6, %v405_v30, %v408_v31  ;;  %v430_v49 = vsel %vm418_vm6, %v408_v31, %v411_v39 }
  0x6d   : > { %v230_v47 = vsel %vm228_vm8, %v229_v40, %v1136_v29  ;;  %v423_v41 = vsel %vm421_vm10, %v411_v39, 2102212464  ;;  %v427_v48 = vsel %vm421_vm10, %v414_v44, 920167782  ;;  %v431_v53 = vsel %vm421_vm10, %v417_v45, 1326507024 }
  0x6e   : > { %v231_v50 = vadd.s32 %v230_v47, %v226_v38  ;;  %v424_v51 = vsel %vm420_vm9, %v408_v31, %v423_v41  ;;  %v428_v52 = vsel %vm420_vm9, %v411_v39, %v427_v48  ;;  %v432_v57 = vsel %vm420_vm9, %v414_v44, %v431_v53 }
  0x6f   : > { %v425_v54 = vsel %vm419_vm7, %v422_v46, %v424_v51  ;;  %v429_v56 = vsel %vm419_vm7, %v426_v42, %v428_v52  ;;  %v433_v59 = vsel %vm419_vm7, %v430_v49, %v432_v57  ;;  %v227_v14 = vadd.s32 %v1135_v28, %v1132_v27 }
  0x70   : > { %v232_v58 = vadd.s32 536870912, %v231_v50  ;;  %v1153_v60 = vmul.u32.u64.low %v1120_v43, %v429_v56  ;;  %v1154_v61 = vmul.u32.u64.high %v1120_v43, %v429_v56, %v1153_v60  ;;  %v441_v1 = vmul.u32 %v1120_v43, %v425_v54 }
  0x71   : > { %v1157_v62 = vmul.u32.u64.low %v1120_v43, %v433_v59  ;;  %v1158_v63 = vmul.u32.u64.high %v1120_v43, %v433_v59, %v1157_v62  ;;  %vm263_vm8 = vweird.f32 %v1106_v21 }
  0x72   : > { %v233_v0 = vshrl.u32 %v232_v58, 30  ;;  %v444_v3 = vadd.s32 1, %v1154_v61 }
  0x73   : > { %vm443_vm11 = vc.u32 %v1158_v63, %v1153_v60  ;;  %v442_v34 = vadd.s32 %v1153_v60, %v1158_v63 }
  0x74   : > { %v234_v2 = vshll.u32 %v233_v0, 30  ;;  %v445_v55 = vsel %vm443_vm11, %v444_v3, %v1154_v61  ;;  %v257_v27 = vsub.s32 4, %v233_v0 }
  0x75   : > { %v446_v5 = vadd.s32 %v445_v55, %v441_v1 }
  0x76   : > { %v235_v4 = vsub.s32 %v231_v50, %v234_v2  ;;  %v258_v46 = vsel %vm173_vm14, %v257_v27, %v233_v0 }
  0x77   : > { %v447_v7 = vadd.s32 536870912, %v446_v5  ;;  %v260_v49 = vsel %vm172_vm15, 0, %v258_v46 }
  0x78   : > { %v237_v6 = vsub.s32 0, %v235_v4  ;;  %v264_v54 = vadd.s32 3, %v260_v49  ;;  %v369_v59 = vand.u32 3, %v260_v49 }
  0x79   : > { %v448_v9 = vshrl.u32 %v447_v7, 30 }
  0x7a   : > { %v741_v8 = vmin.u32 %v237_v6, %v235_v4  ;;  %v265_v58 = vand.u32 3, %v264_v54  ;;  %vm374_vm3 = vcmp.eq.s32.totalorder %v369_v59, 2  ;;  %vm371_vm5 = vcmp.eq.s32.totalorder %v369_v59, 0 }
  0x7b   : > { %v449_v11 = vshll.u32 %v448_v9, 30  ;;  %v472_v53 = vsub.s32 4, %v448_v9  ;;  %vm370_vm7 = vcmp.lt.s32.totalorder %v369_v59, 2 }
  0x7c   : > { %v239_v10 = vclz %v741_v8  ;;  %vm270_vm2 = vcmp.eq.s32.totalorder %v265_v58, 2  ;;  %vm267_vm4 = vcmp.eq.s32.totalorder %v265_v58, 0  ;;  %vm266_vm6 = vcmp.lt.s32.totalorder %v265_v58, 2 }
  0x7d   : > { %v450_v13 = vsub.s32 %v446_v5, %v449_v11  ;;  %v473_v57 = vsel %vm388_vm0, %v472_v53, %v448_v9 }
  0x7e   : > { %v742_v12 = vadd.s32 4294967294, %v239_v10  ;;  %v475_v62 = vsel %vm387_vm1, 0, %v473_v57 }
  0x7f   : > { %v452_v15 = vsub.s32 0, %v450_v13  ;;  %v479_v2 = vadd.s32 3, %v475_v62  ;;  %v584_v9 = vand.u32 3, %v475_v62 }
  0x80   : > { %vm743_vm12 = vcmp.lt.s32.totalorder %v742_v12, 0 }
  0x81   : > { %v242_v43 = vsel %vm743_vm12, 0, %v742_v12  ;;  %v749_v19 = vmin.u32 %v452_v15, %v450_v13  ;;  %v480_v8 = vand.u32 3, %v479_v2  ;;  %vm589_vm10 = vcmp.eq.s32.totalorder %v584_v9, 2 }
  0x82   : > { %v243_v16 = vsub.s32 32, %v242_v43  ;;  %v244_v17 = vshll.u32 %v235_v4, %v242_v43  ;;  %v247_v18 = vsub.s32 4294967266, %v242_v43  ;;  %vm586_vm12 = vcmp.eq.s32.totalorder %v584_v9, 0 }
  0x83   : > { %v454_v26 = vclz %v749_v19  ;;  %vm485_vm9 = vcmp.eq.s32.totalorder %v480_v8, 2  ;;  %vm482_vm11 = vcmp.eq.s32.totalorder %v480_v8, 0 }
  0x84   : > { %v245_v20 = vshrl.u32 %v227_v14, %v243_v16  ;;  %v248_v24 = vadd.s32 127, %v247_v18 }
  0x85   : > { %v750_v31 = vadd.s32 4294967294, %v454_v26 }
  0x86   : > { %v246_v29 = vor.u32 %v245_v20, %v244_v17  ;;  %v249_v30 = vshll.u32 %v248_v24, 23 }
  0x87   : > { %vm751_vm13 = vcmp.lt.s32.totalorder %v750_v31, 0 }
  0x88   : > { %v250_v32 = vor.u32 4788187, %v249_v30  ;;  %v253_v33 = vcvt.s32.f32 %v246_v29  ;;  %v457_v28 = vsel %vm751_vm13, 0, %v750_v31  ;;  %vm481_vm13 = vcmp.lt.s32.totalorder %v480_v8, 2 }
  0x89   : > { %v458_v36 = vsub.s32 32, %v457_v28  ;;  %v459_v37 = vshll.u32 %v450_v13, %v457_v28  ;;  %v462_v38 = vsub.s32 4294967266, %v457_v28 }
  0x8a   : > { %v251_v35 = vand.u32 2147483647, %v250_v32 }
  0x8b   : > { %v460_v40 = vshrl.u32 %v442_v34, %v458_v36  ;;  %v463_v44 = vadd.s32 127, %v462_v38 }
  0x8c   : > { %v254_v39 = vmul.f32 %v253_v33, %v251_v35 }
  0x8d   : > { %v461_v42 = vor.u32 %v460_v40, %v459_v37  ;;  %v464_v47 = vshll.u32 %v463_v44, 23 }
  0x8e   : > { %v255_v45 = vxor.u32 2147483648, %v254_v39 }
  0x8f   : > { %v465_v50 = vor.u32 4788187, %v464_v47  ;;  %v468_v51 = vcvt.s32.f32 %v461_v42 }
  0x90   : > { %v256_v41 = vsel %vm173_vm14, %v255_v45, %v254_v39  ;;  %vm585_vm14 = vcmp.lt.s32.totalorder %v584_v9, 2 }
  0x91   : > { %v259_v48 = vsel %vm172_vm15, %v1106_v21, %v256_v41  ;;  %v466_v52 = vand.u32 2147483647, %v465_v50  ;;  %vm478_vm15 = vweird.f32 %v1108_v22 }
  0x92   : > { %848 = vcosq.f32 %v259_v48 }
  0x93   : > { %850 = vsinq.f32 %v259_v48  ;;  %v469_v56 = vmul.f32 %v468_v51, %v466_v52 }
  0x95   : > { %v470_v23 = vxor.u32 2147483648, %v469_v56 }
  0x97   : > { %v471_v60 = vsel %vm388_vm0, %v470_v23, %v469_v56 }
  0x98   : > { %v474_v61 = vsel %vm387_vm1, %v1108_v22, %v471_v60 }
  0x99   : > { %852 = vcosq.f32 %v474_v61 }
  0x9a   : > { %854 = vsinq.f32 %v474_v61 }
  0x9c   : > { %v849_v63 = vpop.eup %848 }
  0x9d   : > { %v851_v0 = vpop.eup %850  ;;  %v271_v1 = vxor.u32 2147483648, %v849_v63 }
  0x9e   : > { %v268_v25 = vxor.u32 2147483648, %v851_v0 }
  0x9f   : > { %v272_v3 = vsel %vm270_vm2, %v271_v1, %v851_v0  ;;  %v376_v4 = vsel %vm374_vm3, %v271_v1, %v851_v0 }
  0xa0   : > { %v269_v55 = vsel %vm267_vm4, %v849_v63, %v268_v25  ;;  %v373_v5 = vsel %vm371_vm5, %v849_v63, %v268_v25 }
  0xa1   : > { %v273_v6 = vsel %vm266_vm6, %v269_v55, %v272_v3  ;;  %v377_v7 = vsel %vm370_vm7, %v373_v5, %v376_v4 }
  0xa2   : > { %v274_v10 = vsel %vm263_vm8, nan, %v273_v6  ;;  %v378_v11 = vsel %vm263_vm8, nan, %v377_v7 }
  0xa3   : > { %275 = vst [vmem:[#allocation2] sm:$0xf] %v274_v10  ;;  %379 = vst [vmem:[#allocation2 + $0x4] sm:$0xf] %v378_v11  ;;  %v853_v12 = vpop.eup %852 }
  0xa4   : > { %v855_v13 = vpop.eup %854  ;;  %v486_v14 = vxor.u32 2147483648, %v853_v12 }
  0xa5   : > { %v483_v21 = vxor.u32 2147483648, %v855_v13 }
  0xa6   : > { %v487_v43 = vsel %vm485_vm9, %v486_v14, %v855_v13  ;;  %v591_v15 = vsel %vm589_vm10, %v486_v14, %v855_v13 }
  0xa7   : > { %v484_v16 = vsel %vm482_vm11, %v853_v12, %v483_v21  ;;  %v588_v17 = vsel %vm586_vm12, %v853_v12, %v483_v21 }
  0xa8   : > { %v488_v18 = vsel %vm481_vm13, %v484_v16, %v487_v43  ;;  %v592_v19 = vsel %vm585_vm14, %v588_v17, %v591_v15 }
  0xa9   : > { %v489_v20 = vsel %vm478_vm15, nan, %v488_v18  ;;  %v593_v24 = vsel %vm478_vm15, nan, %v592_v19 }
  0xaa   : > { %490 = vst [vmem:[#allocation2 + $0x8] sm:$0xf] %v489_v20  ;;  %594 = vst [vmem:[#allocation2 + $0xc] sm:$0xf] %v593_v24 }
  0xab PF: > { %v595_v26 = vld [vmem:[%s1096_s17] sm:$0xf]  ;;  %v597_v29 = vld [vmem:[#allocation2] sm:$0xff]  ;;  %p1222_p7 = scmp.ne.s32.totalorder %s1218_s23, 0 }
  0xac   : > { %596 = vst [vmem:[%s1102_s18] sm:$0xf] %v595_v26  ;;  %599 = vst [vmem:[%s1102_s18 + $0x4] sm:$0xff] %v597_v29  ;;  %s768_s20 = smul.u32 (%p1222_p7), 6, %s936_s9 }
  0xad   : > { %607 = sbr.rel (!%p1222_p7) target bundleno = 187 (0xbb), region = 36 }
  0xae   : > { %s609_s14 = sadd.s32 (%p1222_p7), %s940_s10, %s768_s20 }
  0xaf   : > { %s756_s21 = sshll.u32 (%p1222_p7), %s609_s14, 3 }
  0xb0   : > { %s611_s25 = scalar_lea.vmem (%p1222_p7), %s1215_s1, %s756_s21 }
  0xb1   : > { %v598_v30 = vld [vmem:[#allocation2 + $0x8] sm:$0xff] }
  0xb2   : > { %600 = vst [vmem:[%s1102_s18 + $0xc] sm:$0xff] %v598_v30 }
  0xb3   : > { %v643_v22 = vld [vmem:[%s1102_s18] sm:$0xff] (%p1222_p7) }
  0xb4   : > { %644 = vst [vmem:[%s611_s25] sm:$0xff] %v643_v22 }
  0xb9   : > { %v645_v31 = vld [vmem:[%s1102_s18 + $0x8] sm:$0xff]  ;;  %v647_v32 = vld [vmem:[%s1102_s18 + $0x10] sm:$0xff] }
  0xba   : > { %646 = vst [vmem:[%s611_s25 + $0x10] sm:$0xff] %v645_v31  ;;  %648 = vst [vmem:[%s611_s25 + $0x20] sm:$0xff] %v647_v32 }
  0xbb PF: > { %s14_s13 = sadd.s32 1, %s952_s13   ;;  %s1223_s6 = smov %s928_s7 }
  0xbc   : > { %p11_p12 = scmp.ge.s32.totalorder %s14_s13, 6   ;;  %s1224_s7 = smov %s932_s8 }
  0xbd   : > { %s1225_s8 = smov %s1048_s26  ;;  %s1226_s9 = smov %s944_s11 }
  0xbe   : > { %s1227_s10 = smov %s948_s12  ;;  %s1228_s11 = smov %s1231_s15 }
  0xbf   : > { %s1229_s12 = smov %s1235_s16  ;;  %13 = sbr.rel (!%p11_p12) target bundleno = 5 (0x5), region = 106 }
  0xc6   :  { %664 = vsyncpa [#allocation4], 1 }
  0xc7   :  { %666 = vsyncpa [#allocation4 + $0x1], 1 }

</bundles_post_ra>
